<compile_context>
chip_gen: v7x
topology: tpu7x:2x2x1
jax: 0.10.0
libtpu: 0.0.40
codegen_flags: <defaults>
</compile_context>

<pallas_src>
import jax
import jax.numpy as jnp
from jax.experimental import pallas as pl
from jax.experimental.pallas import tpu as pltpu


def simple_body_kernel(x_ref, w_ref, b_ref, o_ref):
    # MXU matmul with f32 accumulation; bias + ReLU fused on the VPU
    # (cheap, fully hidden under the DMA critical path).
    acc = jnp.dot(x_ref[...], w_ref[...], preferred_element_type=jnp.float32)
    o_ref[...] = jnp.maximum(acc + b_ref[...], 0.0).astype(o_ref.dtype)


def _round_up(v, m):
    return (v + m - 1) // m * m


def simple_body_forward(x, w, b, *, block_b_max=4096):
    """x: (B, D_in) f32, w: (D_in, 128) f32, b: (1, 128) f32 -> (B, 128) f32."""
    B, D_in = x.shape
    H = w.shape[1]

    if B <= 1024:
        # Single block, no grid: avoid all per-step pipelining overhead.
        # At these sizes the call is launch-latency bound anyway.
        return pl.pallas_call(
            simple_body_kernel,
            out_shape=jax.ShapeDtypeStruct((B, H), jnp.float32),
            in_specs=[
                pl.BlockSpec(memory_space=pltpu.VMEM),
                pl.BlockSpec(memory_space=pltpu.VMEM),
                pl.BlockSpec(memory_space=pltpu.VMEM),
            ],
            out_specs=pl.BlockSpec(memory_space=pltpu.VMEM),
        )(x, w, b)

    # Batch-tiled path: big tiles to amortize per-step overhead, but at least
    # 2 grid steps so v7x can split the "parallel" axis across its 2 TCs.
    # block_b=4096 double-buffered is ~5 MiB of VMEM -> fits all chips
    # (v5e 16 MiB default scoped, v6e 32/128 MiB, v7x 32/64 MiB).
    half = _round_up(pl.cdiv(B, 2), 8)
    block_b = max(512, min(block_b_max, half))
    nb = pl.cdiv(B, block_b)  # uneven last block handled by Pallas (no pad/slice)

    return pl.pallas_call(
        simple_body_kernel,
        out_shape=jax.ShapeDtypeStruct((B, H), jnp.float32),
        grid=(nb,),
        in_specs=[
            pl.BlockSpec((block_b, D_in), lambda i: (i, 0)),  # x: streamed over B
            pl.BlockSpec((D_in, H), lambda i: (0, 0)),        # w: resident in VMEM
            pl.BlockSpec((1, H), lambda i: (0, 0)),           # b: resident in VMEM
        ],
        out_specs=pl.BlockSpec((block_b, H), lambda i: (i, 0)),
        compiler_params=pltpu.CompilerParams(
            dimension_semantics=("parallel",),
        ),
    )(x, w, b)


if __name__ == "__main__":
    # Module config: input_shape=(32,), hidden=128 (fixed by SimpleBody), noisy=False
    # TODO(synk): NoisyLinear branch (noisy=True) not implemented; only the plain Linear path.
    D_IN = 32
    HIDDEN = 128
    BATCH = 2

    key = jax.random.PRNGKey(0)
    kx, kw, kb, kx2 = jax.random.split(key, 4)

    # Deterministic synthetic parameters (PyTorch nn.Linear default init style:
    # uniform(-1/sqrt(fan_in), 1/sqrt(fan_in))). PyTorch weight is (128, D_in);
    # stored transposed as (D_in, 128) for the kernel.
    bound = 1.0 / (D_IN ** 0.5)
    w = jax.random.uniform(kw, (D_IN, HIDDEN), jnp.float32, -bound, bound)
    b = jax.random.uniform(kb, (1, HIDDEN), jnp.float32, -bound, bound)

    # --- small-batch (grid-less) path: the shape implied by the module ---
    x = jax.random.normal(kx, (BATCH, D_IN), jnp.float32)
    out = jax.block_until_ready(simple_body_forward(x, w, b))
    ref = jnp.maximum(x @ w + b, 0.0)
    assert out.shape == (BATCH, HIDDEN)
    assert jnp.allclose(out, ref, atol=1e-5, rtol=1e-5)

    # --- batch-tiled path (exercises large tiles, >=2 grid steps, and the
    #     uneven last block with NO padding / output slicing) ---
    B_BIG = 1543  # > 1024 and not a multiple of the chosen block size
    x_big = jax.random.normal(kx2, (B_BIG, D_IN), jnp.float32)
    out_big = jax.block_until_ready(simple_body_forward(x_big, w, b))
    ref_big = jnp.maximum(x_big @ w + b, 0.0)
    assert out_big.shape == (B_BIG, HIDDEN)
    assert jnp.allclose(out_big, ref_big, atol=1e-5, rtol=1e-5)

    print("KERNEL_OK")
</pallas_src>

<mosaic_0001>
module attributes {stable_mosaic.version = 11 : i64} {
  func.func @simple_body_kernel(%arg0: memref<2x32xf32, #tpu.memory_space<vmem>>, %arg1: memref<32x128xf32, #tpu.memory_space<vmem>>, %arg2: memref<1x128xf32, #tpu.memory_space<vmem>>, %arg3: memref<2x128xf32, #tpu.memory_space<vmem>>) attributes {dimension_semantics = [], scalar_prefetch = 0 : i64, scratch_operands = 0 : i64, tpu.core_type = #tpu.core_type<tc>} {
    %c0 = arith.constant 0 : index
    %c0_0 = arith.constant 0 : index
    %0 = vector.load %arg0[%c0, %c0_0] : memref<2x32xf32, #tpu.memory_space<vmem>>, vector<2x32xf32>
    %c0_1 = arith.constant 0 : index
    %c0_2 = arith.constant 0 : index
    %1 = vector.load %arg1[%c0_1, %c0_2] : memref<32x128xf32, #tpu.memory_space<vmem>>, vector<32x128xf32>
    %cst = arith.constant dense<0.000000e+00> : vector<2x128xf32>
    %2 = tpu.matmul %0, %1, %cst {dimension_numbers = #tpu.dot_dimension_numbers<[1], [0], [0], [1], [0, 0, 1, 1], [], []>} : vector<2x32xf32>, vector<32x128xf32>, vector<2x128xf32> -> vector<2x128xf32>
    %c0_3 = arith.constant 0 : index
    %c0_4 = arith.constant 0 : index
    %3 = vector.load %arg2[%c0_3, %c0_4] : memref<1x128xf32, #tpu.memory_space<vmem>>, vector<1x128xf32>
    %4 = vector.broadcast %3 : vector<1x128xf32> to vector<2x128xf32>
    %5 = arith.addf %2, %4 : vector<2x128xf32>
    %cst_5 = arith.constant 0.000000e+00 : f32
    %6 = vector.broadcast %cst_5 : f32 to vector<2x128xf32>
    %7 = arith.maximumf %5, %6 : vector<2x128xf32>
    %c0_6 = arith.constant 0 : index
    %c0_7 = arith.constant 0 : index
    %8 = vector.load %arg3[%c0_6, %c0_7] : memref<2x128xf32, #tpu.memory_space<vmem>>, vector<2x128xf32>
    tpu.vector_store %arg3[%c0_6, %c0_7], %7 {strides = array<i32>} : memref<2x128xf32, #tpu.memory_space<vmem>>, vector<2x128xf32>,
    return
  }
}

</mosaic_0001>

<bundles_post_ra>
// kernel: tpu_custom_call.1
= control target key start
LH: loop header
LB: loop body
LE: loop exit
PB: predicated region body
PF: predicated region fallthrough
CT: control target
= control target key end

     0   :  { %8 = vsyncpa [#allocation3], 0  ;;  %s323_s0 = inlined_call_operand.hbm [shape: f32[2,32], index: 0, kind: input, shape index: {}]   ;;  %s324_s1 = inlined_call_operand.hbm [shape: f32[32,128], index: 1, kind: input, shape index: {}]   ;;  %s325_s2 = inlined_call_operand.vmem [shape: f32[1,128], index: 2, kind: input, shape index: {}]   ;;  %s326_s3 = inlined_call_operand.hbm [shape: f32[2,128], index: 3, kind: output, shape index: {}]  }
   0x1   :  { %9 = vsyncpa [#allocation6], 0 }
   0x2   :  { %10 = vsyncpa [#allocation4], 0  ;;  %s249_s12 = smov [#allocation2]   ;;  %s250_s14 = smov [#allocation5]  }
   0x3   :  { %s17_s13 = sshll.u32 %s249_s12, 4  ;;  %s26_s15 = sshll.u32 %s250_s14, 4  ;;  %s18_s13 = int_to_ptr.vmem [resolvable:$true] %s17_s13  ;;  %s277_s15 = int_to_ptr.vmem [resolvable:$true] %s26_s15 }
   0x4   :  { %s177_s18 = scalar_lea.hbm %s323_s0, 32 }
   0x5   :  { %p178_p0 = scmp.ne.s32.totalorder %s323_s0, %s177_s18  ;;  %p181_p1 = scmp.lt.u32.totalorder %s177_s18, %s323_s0 }
   0x7   :  { %p183_p2 = pnand %p181_p1, %p178_p0 }
   0x9   :  { %186 = shalt.err (!%p183_p2)
}
   0xa   :  { %s187_s23 = scalar_lea.vmem %s18_s13, 32  ;;  %p192_p4 = scmp.lt.s32.totalorder %s18_s13, %s18_s13 }
   0xb   :  { %p188_p3 = scmp.ne.s32.totalorder %s18_s13, %s187_s23  ;;  %p193_p5 = scmp.lt.s32.totalorder %s187_s23, %s187_s23 }
   0xd   :  { %p194_p6 = por %p193_p5, %p192_p4 }
   0xf   :  { %p195_p7 = pnand %p194_p6, %p188_p3 }
  0x11   :  { %198 = shalt.err (!%p195_p7)
}
  0x12   :  { %20 = dma.hbm_to_vmem [thread:$0]  %s323_s0, 32, %s18_s13, [#allocation3]  }
  0x13   :  { %s199_s28 = scalar_lea.hbm %s324_s1, 512 }
  0x14   :  { %p200_p8 = scmp.ne.s32.totalorder %s324_s1, %s199_s28  ;;  %p203_p9 = scmp.lt.u32.totalorder %s199_s28, %s324_s1 }
  0x16   :  { %p205_p10 = pnand %p203_p9, %p200_p8 }
  0x18   :  { %208 = shalt.err (!%p205_p10)
}
  0x19   :  { %s209_s6 = scalar_lea.vmem %s277_s15, 512  ;;  %p214_p12 = scmp.lt.s32.totalorder %s277_s15, %s277_s15 }
  0x1a   :  { %p210_p11 = scmp.ne.s32.totalorder %s277_s15, %s209_s6  ;;  %p215_p13 = scmp.lt.s32.totalorder %s209_s6, %s209_s6 }
  0x1c   :  { %p216_p0 = por %p215_p13, %p214_p12 }
  0x1e   :  { %p217_p1 = pnand %p216_p0, %p210_p11 }
  0x20   :  { %220 = shalt.err (!%p217_p1)
}
  0x21   :  { %s251_s0 = smov 128   ;;  %s252_s7 = smov 8  }
  0x22   :  { %32 = dma.hbm_to_vmem [thread:$0]  %s324_s1, 512, %s277_s15, [#allocation6], %s251_s0, %s251_s0, %s252_s7  }
  0x23   :  { %243 = dma.done.wait [#allocation3], 32  }
  0x24   :  { %244 = vsyncadd [#allocation3], 4294967264 }
  0x25   :  { %245 = dma.done.wait [#allocation6], 512  }
  0x26   :  { %246 = vsyncadd [#allocation6], 4294966784  ;;  %v253_v0 = vmov 0.0|0.0   ;;  %vm254_vm0 = vmmov 0   ;;  %v255_v1 = vmov 0.0   ;;  %v42_v2 = vld [vmem:[#allocation5] sm:$0xff] }
  0x27   :  { %163 = vmatprep.subr.bf16.mxu0 %v253_v0  ;;  %160 = vmatprep.mubr.msk.f32.mxu0 %vm254_vm0, %v255_v1  ;;  %v43_v3 = vld [vmem:[#allocation5 + $0x8] sm:$0xff]  ;;  %v44_v4 = vld [vmem:[#allocation5 + $0x10] sm:$0xff]  ;;  %v45_v6 = vld [vmem:[#allocation5 + $0x18] sm:$0xff]  ;;  %vm53_vm1 = vcmask 261120   ;;  %s256_s11 = smov [#allocation7]  }
  0x28   :  { %v164_v5 = vpack.c.bf16 %v43_v3, %v42_v2  ;;  %v167_v7 = vpack.c.bf16 %v45_v6, %v44_v4  ;;  %v41_v8 = vld [vmem:[#allocation2] sm:$0x3]  ;;  %s135_s12 = sshll.u32 %s256_s11, 4  ;;  %s136_s12 = int_to_ptr.vmem [resolvable:$true] %s135_s12 }
  0x29   :  { %v145_v9 = vld [vmem:[%s325_s2] ss:$0 sm:$0xff]  ;;  %s221_s13 = scalar_lea.vmem %s136_s12, 32  ;;  %p226_p3 = scmp.lt.s32.totalorder %s136_s12, %s136_s12 }
  0x2a   :  { %165 = vmatpush3.bf16.msra.mxu0 %v164_v5  ;;  %p222_p2 = scmp.ne.s32.totalorder %s136_s12, %s221_s13  ;;  %p227_p4 = scmp.lt.s32.totalorder %s221_s13, %s221_s13 }
  0x2b   :  { %166 = vmatprep.subr.bf16.mxu0 %v253_v0 }
  0x2c   :  { %p228_p5 = por %p227_p4, %p226_p3 }
  0x2e   :  { %168 = vmatpush3.bf16.msra.mxu0 %v167_v7  ;;  %p229_p6 = pnand %p228_p5, %p222_p2 }
  0x31   :  { %161 = vmatmul.mubr.msk.f32.vlgmr.msra.gmra.mrb[0].mxu0 %vm53_vm1, %v41_v8 }
 0x104   :  { %v123_v10 = vpop.f32.mrb[0].mxu0 }
 0x105   :  { %v124_v11 = vadd.f32 %v145_v9, %v123_v10  ;;  %v162_v12 = vpop.f32.mrb[1].mxu0 }
 0x107   :  { %v127_v13 = vmax.f32 %v124_v11, 0.0 }
 0x109   :  { %128 = vst [vmem:[#allocation7] sm:$0x3] %v127_v13 }
 0x10a   :  { %232 = shalt.err (!%p229_p6)
}
 0x10b   :  { %s233_s16 = scalar_lea.hbm %s326_s3, 32 }
 0x10c   :  { %p234_p7 = scmp.ne.s32.totalorder %s326_s3, %s233_s16  ;;  %p237_p8 = scmp.lt.u32.totalorder %s233_s16, %s326_s3 }
 0x10e   :  { %p239_p9 = pnand %p237_p8, %p234_p7 }
 0x110   :  { %242 = shalt.err (!%p239_p9)
}
 0x111   :  { %138 = dma.vmem_to_hbm [thread:$0]  %s136_s12, 32, %s326_s3, [#allocation4]  }
 0x112   :  { %247 = dma.done.wait [#allocation4], 32  }
 0x113   :  { %248 = vsyncadd [#allocation4], 4294967264 }
 0x114   :  { %142 = vsyncpa [#allocation3], 1 }
 0x115   :  { %143 = vsyncpa [#allocation6], 1 }
 0x116   :  { %144 = vsyncpa [#allocation4], 1 }

</bundles_post_ra>
